<compile_context>
chip_gen: v7x
topology: tpu7x:2x2x1
jax: 0.10.0
libtpu: 0.0.40
codegen_flags: <defaults>
</compile_context>

<pallas_src>
import functools

import jax
import jax.numpy as jnp
from jax.experimental import pallas as pl
from jax.experimental.pallas import tpu as pltpu


def _round_up(x, m):
    return (x + m - 1) // m * m


def _pick_tile(m, max_tile=1024):
    """Largest power-of-two tile <= max_tile dividing m, preferring >=2 grid
    steps (so the parallel axis shards across both v7x TensorCores)."""
    single = None
    cand = max_tile
    while cand >= 8:
        if m % cand == 0:
            if m // cand >= 2:
                return cand
            if single is None:
                single = cand
        cand //= 2
    return single


# ---------------------------------------------------------------------------
# Kernel 1: all-capsule convolution as a K-tiled im2col matmul (+ bias).
# ---------------------------------------------------------------------------
def _caps_conv_kernel(a_ref, w_ref, b_ref, o_ref, acc_ref):
    k = pl.program_id(1)

    @pl.when(k == 0)
    def _():
        acc_ref[...] = jnp.zeros_like(acc_ref)

    acc_ref[...] += jnp.dot(a_ref[...], w_ref[...],
                            preferred_element_type=jnp.float32)

    @pl.when(k == pl.num_programs(1) - 1)
    def _():
        o_ref[...] = (acc_ref[...] + b_ref[...]).astype(o_ref.dtype)


def _conv_matmul(a, w, b, *, tm, tk):
    m_pad, k_pad = a.shape
    _, c_pad = w.shape
    nm = m_pad // tm
    nk = k_pad // tk

    cost = pl.CostEstimate(
        flops=2 * m_pad * k_pad * c_pad,
        transcendentals=0,
        bytes_accessed=4 * (m_pad * k_pad + k_pad * c_pad + c_pad + m_pad * c_pad),
    )

    return pl.pallas_call(
        _caps_conv_kernel,
        out_shape=jax.ShapeDtypeStruct((m_pad, c_pad), a.dtype),
        grid_spec=pltpu.PrefetchScalarGridSpec(
            num_scalar_prefetch=0,
            grid=(nm, nk),
            in_specs=[
                pl.BlockSpec((tm, tk), lambda i, k: (i, k)),
                pl.BlockSpec((tk, c_pad), lambda i, k: (k, 0)),   # invariant
                pl.BlockSpec((1, c_pad), lambda i, k: (0, 0)),    # invariant
            ],
            out_specs=pl.BlockSpec((tm, c_pad), lambda i, k: (i, 0)),
            scratch_shapes=[pltpu.VMEM((tm, c_pad), jnp.float32)],
        ),
        compiler_params=pltpu.CompilerParams(
            dimension_semantics=("parallel", "arbitrary"),
            vmem_limit_bytes=32 * 1024 * 1024,
        ),
        cost_estimate=cost,
    )(a, w, b)


# ---------------------------------------------------------------------------
# Kernel 2: squash(v) = |v|^2/(|v|^2+1) * v/|v|, fused per (sample, capsule)
# row over a lane-dense last axis.
# ---------------------------------------------------------------------------
def _squash_kernel(x_ref, o_ref):
    x = x_ref[...].astype(jnp.float32)
    norm = jnp.sum(x * x, axis=-1, keepdims=True)
    scale = jnp.sqrt(norm) / (norm + 1.0)     # == norm/(norm+1) / sqrt(norm)
    o_ref[...] = (x * scale).astype(o_ref.dtype)


def _squash_rows(y):
    rows, d = y.shape
    tr = _pick_tile(rows, max_tile=512)
    if tr is None:
        tr = rows  # single full-extent block is always a legal block shape
    return pl.pallas_call(
        _squash_kernel,
        out_shape=jax.ShapeDtypeStruct((rows, d), y.dtype),
        grid_spec=pltpu.PrefetchScalarGridSpec(
            num_scalar_prefetch=0,
            grid=(rows // tr,),
            in_specs=[pl.BlockSpec((tr, d), lambda i: (i, 0))],
            out_specs=pl.BlockSpec((tr, d), lambda i: (i, 0)),
        ),
        compiler_params=pltpu.CompilerParams(
            dimension_semantics=("parallel",),
        ),
    )(y)


# ---------------------------------------------------------------------------
# Wrapper: PrimaryCaps forward.
# ---------------------------------------------------------------------------
@functools.partial(jax.jit, static_argnames=("stride", "padding"))
def primary_caps_pallas(x_nchw, weights, biases, *, stride=1, padding=0):
    """x_nchw: (N, Cin, H, W); weights: (num_caps, Cout, Cin, KH, KW);
    biases: (num_caps, Cout).  Returns (N, Cout*Ho*Wo, num_caps)."""
    N, Cin, H, W = x_nchw.shape
    num_caps, Cout, _, KH, KW = weights.shape

    Ho = (H + 2 * padding - KH) // stride + 1
    Wo = (W + 2 * padding - KW) // stride + 1
    M = N * Ho * Wo
    K = KH * KW * Cin
    C = num_caps * Cout

    # Lane-dense (multiple-of-128) contraction and output-channel axes.
    K_pad = _round_up(K, 128)
    C_pad = _round_up(C, 128)

    # --- glue: im2col patches emitted directly in (N, Ho, Wo, K_pad) -------
    x_nhwc = jnp.transpose(x_nchw, (0, 2, 3, 1))
    x_sp = jnp.pad(x_nhwc, ((0, 0), (padding, padding), (padding, padding), (0, 0)))
    cols = []
    for kh in range(KH):
        for kw in range(KW):
            cols.append(
                x_sp[:, kh:kh + stride * Ho:stride, kw:kw + stride * Wo:stride, :])
    if K_pad > K:
        cols.append(jnp.zeros((N, Ho, Wo, K_pad - K), x_nchw.dtype))
    a = jnp.concatenate(cols, axis=-1).reshape(M, K_pad)

    # Combined weight (KH,KW,Cin, num_caps,Cout) -> (K, C); zero-pad both axes.
    w = jnp.transpose(weights, (3, 4, 2, 0, 1)).reshape(K, C)
    w = jnp.pad(w, ((0, K_pad - K), (0, C_pad - C)))
    b = jnp.pad(biases.reshape(1, C), ((0, 0), (0, C_pad - C)))

    # --- tile the M axis; avoid padding M when a divisor exists ------------
    tm = _pick_tile(M)
    if tm is None:
        tm = min(128, _round_up(M, 8))
        M_pad = _round_up(M, tm)
        a = jnp.pad(a, ((0, M_pad - M), (0, 0)))
    else:
        M_pad = M
    tk = 128
    for cand in (512, 256):
        if K_pad % cand == 0:
            tk = cand
            break

    out_flat = _conv_matmul(a, w, b, tm=tm, tk=tk)            # (M_pad, C_pad)
    out_flat = out_flat[:M, :C]

    # --- match PyTorch's channel-major flatten per capsule -----------------
    y = out_flat.reshape(N, Ho, Wo, num_caps, Cout)
    y = jnp.transpose(y, (0, 3, 4, 1, 2))                     # (N, caps, Cout, Ho, Wo)
    y = y.reshape(N * num_caps, Cout * Ho * Wo)

    y = _squash_rows(y)                                       # fused squash

    y = y.reshape(N, num_caps, Cout * Ho * Wo)
    return jnp.transpose(y, (0, 2, 1))                        # (N, D, num_caps)


# ---------------------------------------------------------------------------
# Pure-JAX reference (mirrors the PyTorch module).
# ---------------------------------------------------------------------------
def _squash_ref(t):
    norm = jnp.sum(t * t, axis=-1, keepdims=True)
    return norm / (norm + 1.0) * (t / jnp.sqrt(norm))


def primary_caps_reference(x_nchw, weights, biases, *, stride=1, padding=0):
    N = x_nchw.shape[0]
    num_caps = weights.shape[0]
    outs = []
    for c in range(num_caps):
        y = jax.lax.conv_general_dilated(
            x_nchw, weights[c],
            window_strides=(stride, stride),
            padding=[(padding, padding), (padding, padding)],
            dimension_numbers=("NCHW", "OIHW", "NCHW"),
        )
        y = y + biases[c].reshape(1, -1, 1, 1)
        y = y.reshape(N, -1)
        outs.append(_squash_ref(y))
    return jnp.stack(outs, axis=-1)


if __name__ == "__main__":
    # PrimaryCaps(num_capsules=8,
    #             in_channels=4, out_channels=16, kernel_size=3, padding=1)
    N, Cin, H, W = 2, 4, 16, 16
    num_caps, Cout, KH, KW = 8, 16, 3, 3
    stride, padding = 1, 1

    key = jax.random.PRNGKey(0)
    kx, kw, kb = jax.random.split(key, 3)

    x = jax.random.normal(kx, (N, Cin, H, W), dtype=jnp.float32)
    fan_in = Cin * KH * KW
    bound = 1.0 / (fan_in ** 0.5)
    weights = jax.random.uniform(kw, (num_caps, Cout, Cin, KH, KW),
                                 jnp.float32, minval=-bound, maxval=bound)
    biases = jax.random.uniform(kb, (num_caps, Cout), jnp.float32,
                                minval=-bound, maxval=bound)

    out = primary_caps_pallas(x, weights, biases, stride=stride, padding=padding)
    out = jax.block_until_ready(out)

    ref = primary_caps_reference(x, weights, biases, stride=stride, padding=padding)

    Ho = (H + 2 * padding - KH) // stride + 1
    Wo = (W + 2 * padding - KW) // stride + 1
    assert out.shape == (N, Cout * Ho * Wo, num_caps)
    assert jnp.allclose(out, ref, atol=1e-4, rtol=1e-4), \
        float(jnp.max(jnp.abs(out - ref)))

    print("KERNEL_OK")
</pallas_src>

<mosaic_0001>
module attributes {stable_mosaic.version = 11 : i64} {
  func.func @_caps_conv_kernel(%arg0: i32, %arg1: i32, %arg2: memref<256x128xf32, #tpu.memory_space<vmem>>, %arg3: memref<128x128xf32, #tpu.memory_space<vmem>>, %arg4: memref<1x128xf32, #tpu.memory_space<vmem>>, %arg5: memref<256x128xf32, #tpu.memory_space<vmem>>, %arg6: memref<256x128xf32, #tpu.memory_space<vmem>>) attributes {dimension_semantics = [#tpu.dimension_semantics<parallel>, #tpu.dimension_semantics<arbitrary>], iteration_bounds = array<i64: 2, 1>, scalar_prefetch = 0 : i64, scratch_operands = 1 : i64, tpu.core_type = #tpu.core_type<tc>, window_params = [{transform_indices = @transform_0, window_bounds = array<i64: 256, 128>}, {transform_indices = @transform_1, window_bounds = array<i64: 128, 128>}, {pipeline_mode = #tpu.pipeline_mode<synchronous>, transform_indices = @transform_2, window_bounds = array<i64: 1, 128>}, {transform_indices = @transform_3, window_bounds = array<i64: 256, 128>}]} {
    %c0_i32 = arith.constant 0 : i32
    %0 = arith.cmpi eq, %arg1, %c0_i32 : i32
    %1 = arith.extui %0 : i1 to i32
    %c0_i32_0 = arith.constant 0 : i32
    %2 = arith.cmpi ne, %1, %c0_i32_0 : i32
    scf.if %2 {
      %cst_10 = arith.constant 0.000000e+00 : f32
      %12 = vector.broadcast %cst_10 : f32 to vector<256x128xf32>
      %c0_11 = arith.constant 0 : index
      %c0_12 = arith.constant 0 : index
      %13 = vector.load %arg6[%c0_11, %c0_12] : memref<256x128xf32, #tpu.memory_space<vmem>>, vector<256x128xf32>
      tpu.vector_store %arg6[%c0_11, %c0_12], %12 {strides = array<i32>} : memref<256x128xf32, #tpu.memory_space<vmem>>, vector<256x128xf32>,
    } else {
    }
    %c0 = arith.constant 0 : index
    %c0_1 = arith.constant 0 : index
    %3 = vector.load %arg6[%c0, %c0_1] : memref<256x128xf32, #tpu.memory_space<vmem>>, vector<256x128xf32>
    %c0_2 = arith.constant 0 : index
    %c0_3 = arith.constant 0 : index
    %4 = vector.load %arg2[%c0_2, %c0_3] : memref<256x128xf32, #tpu.memory_space<vmem>>, vector<256x128xf32>
    %c0_4 = arith.constant 0 : index
    %c0_5 = arith.constant 0 : index
    %5 = vector.load %arg3[%c0_4, %c0_5] : memref<128x128xf32, #tpu.memory_space<vmem>>, vector<128x128xf32>
    %cst = arith.constant dense<0.000000e+00> : vector<256x128xf32>
    %6 = tpu.matmul %4, %5, %cst {dimension_numbers = #tpu.dot_dimension_numbers<[1], [0], [0], [1], [0, 0, 1, 1], [], []>} : vector<256x128xf32>, vector<128x128xf32>, vector<256x128xf32> -> vector<256x128xf32>
    %7 = arith.addf %3, %6 : vector<256x128xf32>
    %c0_6 = arith.constant 0 : index
    %c0_7 = arith.constant 0 : index
    %8 = vector.load %arg6[%c0_6, %c0_7] : memref<256x128xf32, #tpu.memory_space<vmem>>, vector<256x128xf32>
    tpu.vector_store %arg6[%c0_6, %c0_7], %7 {strides = array<i32>} : memref<256x128xf32, #tpu.memory_space<vmem>>, vector<256x128xf32>,
    %c0_i32_8 = arith.constant 0 : i32
    %9 = arith.cmpi eq, %arg1, %c0_i32_8 : i32
    %10 = arith.extui %9 : i1 to i32
    %c0_i32_9 = arith.constant 0 : i32
    %11 = arith.cmpi ne, %10, %c0_i32_9 : i32
    scf.if %11 {
      %c0_10 = arith.constant 0 : index
      %c0_11 = arith.constant 0 : index
      %12 = vector.load %arg6[%c0_10, %c0_11] : memref<256x128xf32, #tpu.memory_space<vmem>>, vector<256x128xf32>
      %c0_12 = arith.constant 0 : index
      %c0_13 = arith.constant 0 : index
      %13 = vector.load %arg4[%c0_12, %c0_13] : memref<1x128xf32, #tpu.memory_space<vmem>>, vector<1x128xf32>
      %14 = vector.broadcast %13 : vector<1x128xf32> to vector<256x128xf32>
      %15 = arith.addf %12, %14 : vector<256x128xf32>
      %c0_14 = arith.constant 0 : index
      %c0_15 = arith.constant 0 : index
      %16 = vector.load %arg5[%c0_14, %c0_15] : memref<256x128xf32, #tpu.memory_space<vmem>>, vector<256x128xf32>
      tpu.vector_store %arg5[%c0_14, %c0_15], %15 {strides = array<i32>} : memref<256x128xf32, #tpu.memory_space<vmem>>, vector<256x128xf32>,
    } else {
    }
    return
  }
  func.func @transform_0(%arg0: i32, %arg1: i32) -> (i32, i32) {
    %c0_i32 = arith.constant 0 : i32
    return %arg0, %arg1 : i32, i32
  }
  func.func @transform_1(%arg0: i32, %arg1: i32) -> (i32, i32) {
    %c0_i32 = arith.constant 0 : i32
    %c0_i32_0 = arith.constant 0 : i32
    return %arg1, %c0_i32 : i32, i32
  }
  func.func @transform_2(%arg0: i32, %arg1: i32) -> (i32, i32) {
    %c0_i32 = arith.constant 0 : i32
    %c0_i32_0 = arith.constant 0 : i32
    %c0_i32_1 = arith.constant 0 : i32
    return %c0_i32, %c0_i32_0 : i32, i32
  }
  func.func @transform_3(%arg0: i32, %arg1: i32) -> (i32, i32) {
    %c0_i32 = arith.constant 0 : i32
    %c0_i32_0 = arith.constant 0 : i32
    return %arg0, %c0_i32 : i32, i32
  }
}

module attributes {stable_mosaic.version = 11 : i64} {
  func.func @_squash_kernel(%arg0: i32, %arg1: memref<8x4096xf32, #tpu.memory_space<vmem>>, %arg2: memref<8x4096xf32, #tpu.memory_space<vmem>>) attributes {dimension_semantics = [#tpu.dimension_semantics<parallel>], iteration_bounds = array<i64: 2>, scalar_prefetch = 0 : i64, scratch_operands = 0 : i64, tpu.core_type = #tpu.core_type<tc>, window_params = [{transform_indices = @transform_0, window_bounds = array<i64: 8, 4096>}, {transform_indices = @transform_1, window_bounds = array<i64: 8, 4096>}]} {
    %c0 = arith.constant 0 : index
    %c0_0 = arith.constant 0 : index
    %0 = vector.load %arg1[%c0, %c0_0] : memref<8x4096xf32, #tpu.memory_space<vmem>>, vector<8x4096xf32>
    %1 = arith.mulf %0, %0 : vector<8x4096xf32>
    %cst = arith.constant dense<0.000000e+00> : vector<8xf32>
    %2 = vector.multi_reduction <add>, %1, %cst [1] : vector<8x4096xf32> to vector<8xf32>
    %3 = vector.shape_cast %2 : vector<8xf32> to vector<8x1xf32>
    %4 = math.sqrt %3 : vector<8x1xf32>
    %cst_1 = arith.constant 1.000000e+00 : f32
    %5 = vector.broadcast %cst_1 : f32 to vector<8x1xf32>
    %6 = arith.addf %3, %5 : vector<8x1xf32>
    %7 = arith.divf %4, %6 : vector<8x1xf32>
    %8 = vector.broadcast %7 : vector<8x1xf32> to vector<8x4096xf32>
    %9 = arith.mulf %0, %8 : vector<8x4096xf32>
    %c0_2 = arith.constant 0 : index
    %c0_3 = arith.constant 0 : index
    %10 = vector.load %arg2[%c0_2, %c0_3] : memref<8x4096xf32, #tpu.memory_space<vmem>>, vector<8x4096xf32>
    tpu.vector_store %arg2[%c0_2, %c0_3], %9 {strides = array<i32>} : memref<8x4096xf32, #tpu.memory_space<vmem>>, vector<8x4096xf32>,
    return
  }
  func.func @transform_0(%arg0: i32) -> (i32, i32) {
    %c0_i32 = arith.constant 0 : i32
    %c0_i32_0 = arith.constant 0 : i32
    return %arg0, %c0_i32 : i32, i32
  }
  func.func @transform_1(%arg0: i32) -> (i32, i32) {
    %c0_i32 = arith.constant 0 : i32
    %c0_i32_0 = arith.constant 0 : i32
    return %arg0, %c0_i32 : i32, i32
  }
}

</mosaic_0001>

<bundles_post_ra>
// kernel: primary_caps_pallas.2
= control target key start
LH: loop header
LB: loop body
LE: loop exit
PB: predicated region body
PF: predicated region fallthrough
CT: control target
= control target key end

     0   :  { %s1070_s12 = smov 0   ;;  %s1072_s13 = smov 0   ;;  %s1263_s0 = inlined_call_operand.vmem [shape: f32[512,128], index: 0, kind: input, shape index: {}]   ;;  %s1264_s1 = inlined_call_operand.vmem [shape: f32[128,128], index: 1, kind: input, shape index: {}]   ;;  %s1265_s2 = inlined_call_operand.vmem [shape: f32[1,128], index: 2, kind: input, shape index: {}]   ;;  %s1266_s3 = inlined_call_operand.vmem [shape: f32[512,128], index: 3, kind: output, shape index: {}]  }
   0x1   :  { %s1074_s14 = smov 0  }
   0x2 LB: > { %s25_s15 = sadd.s32 1, %s1044_s13  ;;  %p818_p0 = scmp.ge.s32.totalorder %s1048_s14, 1  ;;  %s1048_s14 = sphi %s1074_s14, %s13_s14   ;;  %s1044_s13 = sphi %s1072_s13, %s1268_s13   ;;  %s1040_s12 = sphi %s1070_s12, %s1267_s12  }
   0x3   : > { %p27_p1 = scmp.ge.s32.totalorder %s25_s15, 2  ;;  %p166_p2 = scmp.lt.s32.totalorder %s1048_s14, 3 }
   0x5   : > { %s1270_s15 = smov (%p27_p1, %s25_s15), 0  ;;  %p167_p3 = pnand %p818_p0, %p166_p2 }
   0x6   : > { %v319_v0 = vld [vmem:[%s1264_s1] sm:$0xff] (!%p167_p3)  ;;  %v320_v1 = vld [vmem:[%s1264_s1 + $0x8] sm:$0xff] (!%p167_p3)  ;;  %v321_v2 = vld [vmem:[%s1264_s1 + $0x10] sm:$0xff] (!%p167_p3)  ;;  %s819_s22 = sshll.u32 (!%p167_p3), %s1040_s12, 5 }
   0x7   : > { %170 = sbr.rel (%p167_p3) target bundleno = 286 (0x11e), region = 32  ;;  %v954_v3 = vpack.c.bf16 (!%p167_p3), %v320_v1, %v319_v0  ;;  %v322_v4 = vld [vmem:[%s1264_s1 + $0x18] sm:$0xff] (!%p167_p3)  ;;  %p199_p4 = scmp.lt.s32.totalorder (!%p167_p3), %s819_s22, 63  ;;  %v323_v6 = vld [vmem:[%s1264_s1 + $0x20] sm:$0xff] (!%p167_p3)  ;;  %v324_v7 = vld [vmem:[%s1264_s1 + $0x28] sm:$0xff] (!%p167_p3) }
   0x8   : > { %v958_v5 = vpack.c.bf16 (!%p167_p3), %v322_v4, %v321_v2  ;;  %v962_v8 = vpack.c.bf16 (!%p167_p3), %v324_v7, %v323_v6  ;;  %v325_v9 = vld [vmem:[%s1264_s1 + $0x30] sm:$0xff] (!%p167_p3)  ;;  %v326_v10 = vld [vmem:[%s1264_s1 + $0x38] sm:$0xff] (!%p167_p3)  ;;  %v327_v14 = vld [vmem:[%s1264_s1 + $0x40] sm:$0xff] (!%p167_p3) }
   0x9   : > { %955 = vmatprep.subr.bf16.mxu0 (!%p167_p3), %v954_v3  ;;  %986 = vmatprep.subr.bf16.mxu1 (!%p167_p3), %v954_v3  ;;  %v966_v13 = vpack.c.bf16 (!%p167_p3), %v326_v10, %v325_v9  ;;  %v328_v15 = vld [vmem:[%s1264_s1 + $0x48] sm:$0xff] (!%p167_p3)  ;;  %v329_v17 = vld [vmem:[%s1264_s1 + $0x50] sm:$0xff] (!%p167_p3)  ;;  %v330_v18 = vld [vmem:[%s1264_s1 + $0x58] sm:$0xff] (!%p167_p3) }
   0xa   : > { %957 = vmatpush3.bf16.msra.mxu0 (!%p167_p3), %v954_v3  ;;  %994 = vmatpush3.bf16.msra.mxu1 (!%p167_p3), %v954_v3  ;;  %v970_v16 = vpack.c.bf16 (!%p167_p3), %v328_v15, %v327_v14  ;;  %v974_v19 = vpack.c.bf16 (!%p167_p3), %v330_v18, %v329_v17  ;;  %v331_v20 = vld [vmem:[%s1264_s1 + $0x60] sm:$0xff] (!%p167_p3)  ;;  %v332_v21 = vld [vmem:[%s1264_s1 + $0x68] sm:$0xff] (!%p167_p3)  ;;  %v333_v23 = vld [vmem:[%s1264_s1 + $0x70] sm:$0xff] (!%p167_p3) }
   0xb   : > { %959 = vmatprep.subr.bf16.mxu0 (!%p167_p3), %v958_v5  ;;  %987 = vmatprep.subr.bf16.mxu1 (!%p167_p3), %v958_v5  ;;  %v978_v22 = vpack.c.bf16 (!%p167_p3), %v332_v21, %v331_v20  ;;  %v334_v24 = vld [vmem:[%s1264_s1 + $0x78] sm:$0xff] (!%p167_p3)  ;;  %v1181_v56 = vld [vmem:[%s1265_s2] ss:$0 sm:$0xff] (!%p167_p3) }
   0xc   : > { %v982_v25 = vpack.c.bf16 (!%p167_p3), %v334_v24, %v333_v23 }
   0xe   : > { %s1272_s22 = smov (!%p199_p4, %s819_s22), 63  ;;  %961 = vmatpush3.bf16.msra.mxu0 %v958_v5  ;;  %995 = vmatpush3.bf16.msra.mxu1 %v958_v5 }
   0xf   : > { %s820_s29 = sshll.u32 %s1272_s22, 3  ;;  %963 = vmatprep.subr.bf16.mxu0 %v962_v8  ;;  %988 = vmatprep.subr.bf16.mxu1 %v962_v8 }
  0x10   : > { %s1120_s9 = scalar_lea.vmem %s1263_s0, %s820_s29  ;;  %s1188_s8 = scalar_lea.vmem %s1266_s3, %s820_s29 }
  0x11   : > { %v287_v11 = vld [vmem:[%s1120_s9] sm:$0xff]  ;;  %v288_v26 = vld [vmem:[%s1120_s9 + $0x8] sm:$0xff]  ;;  %v289_v28 = vld [vmem:[%s1120_s9 + $0x10] sm:$0xff] }
  0x12   : > { %v303_v12 = vld [vmem:[%s1120_s9 + $0x80] sm:$0xff]  ;;  %906 = vmatprep.mubr.f32.mxu0 %v287_v11  ;;  %965 = vmatpush3.bf16.msra.mxu0 %v962_v8  ;;  %v304_v27 = vld [vmem:[%s1120_s9 + $0x88] sm:$0xff]  ;;  %v305_v29 = vld [vmem:[%s1120_s9 + $0x90] sm:$0xff] }
  0x13   : > { %930 = vmatprep.mubr.f32.mxu1 %v303_v12  ;;  %996 = vmatpush3.bf16.msra.mxu1 %v962_v8  ;;  %v290_v30 = vld [vmem:[%s1120_s9 + $0x18] sm:$0xff]  ;;  %v291_v32 = vld [vmem:[%s1120_s9 + $0x20] sm:$0xff]  ;;  %v292_v34 = vld [vmem:[%s1120_s9 + $0x28] sm:$0xff] }
  0x14   : > { %967 = vmatprep.subr.bf16.mxu0 %v966_v13  ;;  %989 = vmatprep.subr.bf16.mxu1 %v966_v13  ;;  %v306_v31 = vld [vmem:[%s1120_s9 + $0x98] sm:$0xff]  ;;  %v307_v33 = vld [vmem:[%s1120_s9 + $0xa0] sm:$0xff]  ;;  %v308_v35 = vld [vmem:[%s1120_s9 + $0xa8] sm:$0xff] }
  0x15   : > { %v293_v36 = vld [vmem:[%s1120_s9 + $0x30] sm:$0xff]  ;;  %v294_v38 = vld [vmem:[%s1120_s9 + $0x38] sm:$0xff]  ;;  %v295_v40 = vld [vmem:[%s1120_s9 + $0x40] sm:$0xff] }
  0x16   : > { %969 = vmatpush3.bf16.msra.mxu0 %v966_v13  ;;  %v309_v37 = vld [vmem:[%s1120_s9 + $0xb0] sm:$0xff]  ;;  %v310_v39 = vld [vmem:[%s1120_s9 + $0xb8] sm:$0xff]  ;;  %v311_v41 = vld [vmem:[%s1120_s9 + $0xc0] sm:$0xff] }
  0x17   : > { %997 = vmatpush3.bf16.msra.mxu1 %v966_v13  ;;  %971 = vmatprep.subr.bf16.mxu0 %v970_v16  ;;  %v296_v42 = vld [vmem:[%s1120_s9 + $0x48] sm:$0xff]  ;;  %v297_v44 = vld [vmem:[%s1120_s9 + $0x50] sm:$0xff]  ;;  %v298_v46 = vld [vmem:[%s1120_s9 + $0x58] sm:$0xff] }
  0x18   : > { %990 = vmatprep.subr.bf16.mxu1 %v970_v16  ;;  %v312_v43 = vld [vmem:[%s1120_s9 + $0xc8] sm:$0xff]  ;;  %v313_v45 = vld [vmem:[%s1120_s9 + $0xd0] sm:$0xff]  ;;  %v314_v47 = vld [vmem:[%s1120_s9 + $0xd8] sm:$0xff] }
  0x19   : > { %v299_v48 = vld [vmem:[%s1120_s9 + $0x60] sm:$0xff]  ;;  %v300_v50 = vld [vmem:[%s1120_s9 + $0x68] sm:$0xff]  ;;  %v301_v52 = vld [vmem:[%s1120_s9 + $0x70] sm:$0xff] }
  0x1a   : > { %973 = vmatpush3.bf16.msra.mxu0 %v970_v16  ;;  %v315_v49 = vld [vmem:[%s1120_s9 + $0xe0] sm:$0xff]  ;;  %v316_v51 = vld [vmem:[%s1120_s9 + $0xe8] sm:$0xff]  ;;  %v317_v53 = vld [vmem:[%s1120_s9 + $0xf0] sm:$0xff] }
  0x1b   : > { %998 = vmatpush3.bf16.msra.mxu1 %v970_v16  ;;  %975 = vmatprep.subr.bf16.mxu0 %v974_v19  ;;  %v302_v54 = vld [vmem:[%s1120_s9 + $0x78] sm:$0xff] }
  0x1c   : > { %991 = vmatprep.subr.bf16.mxu1 %v974_v19  ;;  %v318_v55 = vld [vmem:[%s1120_s9 + $0xf8] sm:$0xff] }
  0x1e   : > { %977 = vmatpush3.bf16.msra.mxu0 %v974_v19 }
  0x1f   : > { %999 = vmatpush3.bf16.msra.mxu1 %v974_v19  ;;  %979 = vmatprep.subr.bf16.mxu0 %v978_v22 }
  0x20   : > { %992 = vmatprep.subr.bf16.mxu1 %v978_v22 }
  0x22   : > { %981 = vmatpush3.bf16.msra.mxu0 %v978_v22 }
  0x23   : > { %1000 = vmatpush3.bf16.msra.mxu1 %v978_v22  ;;  %983 = vmatprep.subr.bf16.mxu0 %v982_v25 }
  0x24   : > { %993 = vmatprep.subr.bf16.mxu1 %v982_v25 }
  0x26   : > { %985 = vmatpush3.bf16.msra.mxu0 %v982_v25 }
  0x27   : > { %1001 = vmatpush3.bf16.msra.mxu1 %v982_v25 }
  0x29   : > { %907 = vmatmul.mubr.f32.vlgmr.msra.gmra.mrb[0].mxu0 %v288_v26 }
  0x2a   : > { %931 = vmatmul.mubr.f32.vlgmr.msra.gmra.mrb[0].mxu1 %v304_v27  ;;  %909 = vmatprep.mubr.f32.mxu0 %v289_v28 }
  0x2b   : > { %933 = vmatprep.mubr.f32.mxu1 %v305_v29 }
  0x2d   : > { %910 = vmatmul.mubr.f32.gmra.mrb[2].mxu0 %v290_v30 }
  0x2e   : > { %934 = vmatmul.mubr.f32.gmra.mrb[2].mxu1 %v306_v31  ;;  %912 = vmatprep.mubr.f32.mxu0 %v291_v32 }
  0x2f   : > { %936 = vmatprep.mubr.f32.mxu1 %v307_v33 }
  0x31   : > { %913 = vmatmul.mubr.f32.gmra.mrb[4].mxu0 %v292_v34 }
  0x32   : > { %937 = vmatmul.mubr.f32.gmra.mrb[4].mxu1 %v308_v35  ;;  %915 = vmatprep.mubr.f32.mxu0 %v293_v36 }
  0x33   : > { %939 = vmatprep.mubr.f32.mxu1 %v309_v37 }
  0x35   : > { %916 = vmatmul.mubr.f32.gmra.mrb[6].mxu0 %v294_v38 }
  0x36   : > { %940 = vmatmul.mubr.f32.gmra.mrb[6].mxu1 %v310_v39  ;;  %918 = vmatprep.mubr.f32.mxu0 %v295_v40 }
  0x37   : > { %942 = vmatprep.mubr.f32.mxu1 %v311_v41 }
  0x39   : > { %919 = vmatmul.mubr.f32.gmra.mrb[8].mxu0 %v296_v42 }
  0x3a   : > { %943 = vmatmul.mubr.f32.gmra.mrb[8].mxu1 %v312_v43  ;;  %921 = vmatprep.mubr.f32.mxu0 %v297_v44 }
  0x3b   : > { %945 = vmatprep.mubr.f32.mxu1 %v313_v45 }
  0x3d   : > { %922 = vmatmul.mubr.f32.gmra.mrb[10].mxu0 %v298_v46 }
  0x3e   : > { %946 = vmatmul.mubr.f32.gmra.mrb[10].mxu1 %v314_v47  ;;  %924 = vmatprep.mubr.f32.mxu0 %v299_v48 }
  0x3f   : > { %948 = vmatprep.mubr.f32.mxu1 %v315_v49 }
  0x41   : > { %925 = vmatmul.mubr.f32.gmra.mrb[12].mxu0 %v300_v50 }
  0x42   : > { %949 = vmatmul.mubr.f32.gmra.mrb[12].mxu1 %v316_v51  ;;  %927 = vmatprep.mubr.f32.mxu0 %v301_v52 }
  0x43   : > { %951 = vmatprep.mubr.f32.mxu1 %v317_v53 }
  0x45   : > { %928 = vmatmul.mubr.f32.gmra.mrb[14].mxu0 %v302_v54 }
  0x46   : > { %952 = vmatmul.mubr.f32.gmra.mrb[14].mxu1 %v318_v55 }
  0xfc   : > { %v908_v57 = vpop.f32.mrb[0].mxu0 }
  0xfd   : > { %v932_v58 = vpop.f32.mrb[0].mxu1  ;;  %v667_v59 = vadd.f32 %v908_v57, %v1181_v56  ;;  %v401_v61 = vpop.f32.mrb[1].mxu0 }
  0xfe   : > { %v683_v60 = vadd.f32 %v932_v58, %v1181_v56  ;;  %v481_v62 = vpop.f32.mrb[1].mxu1  ;;  %v666_v63 = vadd.f32 %v1181_v56, %v401_v61 }
  0xff   : > { %v682_v0 = vadd.f32 %v1181_v56, %v481_v62  ;;  %699 = vst [vmem:[%s1188_s8 + $0x8] sm:$0xff] %v667_v59 }
 0x100   : > { %715 = vst [vmem:[%s1188_s8 + $0x88] sm:$0xff] %v683_v60  ;;  %698 = vst [vmem:[%s1188_s8] sm:$0xff] %v666_v63  ;;  %v911_v1 = vpop.f32.mrb[2].mxu0 }
 0x101   : > { %714 = vst [vmem:[%s1188_s8 + $0x80] sm:$0xff] %v682_v0  ;;  %v935_v2 = vpop.f32.mrb[2].mxu1  ;;  %v669_v3 = vadd.f32 %v911_v1, %v1181_v56  ;;  %v411_v5 = vpop.f32.mrb[3].mxu0 }
 0x102   : > { %v685_v4 = vadd.f32 %v935_v2, %v1181_v56  ;;  %v491_v6 = vpop.f32.mrb[3].mxu1  ;;  %v668_v7 = vadd.f32 %v1181_v56, %v411_v5 }
 0x103   : > { %v684_v8 = vadd.f32 %v1181_v56, %v491_v6  ;;  %701 = vst [vmem:[%s1188_s8 + $0x18] sm:$0xff] %v669_v3 }
 0x104   : > { %717 = vst [vmem:[%s1188_s8 + $0x98] sm:$0xff] %v685_v4  ;;  %700 = vst [vmem:[%s1188_s8 + $0x10] sm:$0xff] %v668_v7  ;;  %v914_v9 = vpop.f32.mrb[4].mxu0 }
 0x105   : > { %716 = vst [vmem:[%s1188_s8 + $0x90] sm:$0xff] %v684_v8  ;;  %v938_v10 = vpop.f32.mrb[4].mxu1  ;;  %v671_v11 = vadd.f32 %v914_v9, %v1181_v56  ;;  %v421_v13 = vpop.f32.mrb[5].mxu0 }
 0x106   : > { %v687_v12 = vadd.f32 %v938_v10, %v1181_v56  ;;  %v501_v14 = vpop.f32.mrb[5].mxu1  ;;  %v670_v15 = vadd.f32 %v1181_v56, %v421_v13 }
 0x107   : > { %v686_v16 = vadd.f32 %v1181_v56, %v501_v14  ;;  %703 = vst [vmem:[%s1188_s8 + $0x28] sm:$0xff] %v671_v11 }
 0x108   : > { %719 = vst [vmem:[%s1188_s8 + $0xa8] sm:$0xff] %v687_v12  ;;  %702 = vst [vmem:[%s1188_s8 + $0x20] sm:$0xff] %v670_v15  ;;  %v917_v17 = vpop.f32.mrb[6].mxu0 }
 0x109   : > { %718 = vst [vmem:[%s1188_s8 + $0xa0] sm:$0xff] %v686_v16  ;;  %v941_v18 = vpop.f32.mrb[6].mxu1  ;;  %v673_v19 = vadd.f32 %v917_v17, %v1181_v56  ;;  %v431_v21 = vpop.f32.mrb[7].mxu0 }
 0x10a   : > { %v689_v20 = vadd.f32 %v941_v18, %v1181_v56  ;;  %v511_v22 = vpop.f32.mrb[7].mxu1  ;;  %v672_v23 = vadd.f32 %v1181_v56, %v431_v21 }
 0x10b   : > { %v688_v24 = vadd.f32 %v1181_v56, %v511_v22  ;;  %705 = vst [vmem:[%s1188_s8 + $0x38] sm:$0xff] %v673_v19 }
 0x10c   : > { %721 = vst [vmem:[%s1188_s8 + $0xb8] sm:$0xff] %v689_v20  ;;  %704 = vst [vmem:[%s1188_s8 + $0x30] sm:$0xff] %v672_v23  ;;  %v920_v25 = vpop.f32.mrb[8].mxu0 }
 0x10d   : > { %720 = vst [vmem:[%s1188_s8 + $0xb0] sm:$0xff] %v688_v24  ;;  %v944_v26 = vpop.f32.mrb[8].mxu1  ;;  %v675_v27 = vadd.f32 %v920_v25, %v1181_v56  ;;  %v441_v29 = vpop.f32.mrb[9].mxu0 }
 0x10e   : > { %v691_v28 = vadd.f32 %v944_v26, %v1181_v56  ;;  %v521_v30 = vpop.f32.mrb[9].mxu1  ;;  %v674_v31 = vadd.f32 %v1181_v56, %v441_v29 }
 0x10f   : > { %v690_v32 = vadd.f32 %v1181_v56, %v521_v30  ;;  %707 = vst [vmem:[%s1188_s8 + $0x48] sm:$0xff] %v675_v27 }
 0x110   : > { %723 = vst [vmem:[%s1188_s8 + $0xc8] sm:$0xff] %v691_v28  ;;  %706 = vst [vmem:[%s1188_s8 + $0x40] sm:$0xff] %v674_v31  ;;  %v923_v33 = vpop.f32.mrb[10].mxu0 }
 0x111   : > { %722 = vst [vmem:[%s1188_s8 + $0xc0] sm:$0xff] %v690_v32  ;;  %v947_v34 = vpop.f32.mrb[10].mxu1  ;;  %v677_v35 = vadd.f32 %v923_v33, %v1181_v56  ;;  %v451_v37 = vpop.f32.mrb[11].mxu0 }
 0x112   : > { %v693_v36 = vadd.f32 %v947_v34, %v1181_v56  ;;  %v531_v38 = vpop.f32.mrb[11].mxu1  ;;  %v676_v39 = vadd.f32 %v1181_v56, %v451_v37 }
 0x113   : > { %v692_v40 = vadd.f32 %v1181_v56, %v531_v38  ;;  %709 = vst [vmem:[%s1188_s8 + $0x58] sm:$0xff] %v677_v35 }
 0x114   : > { %725 = vst [vmem:[%s1188_s8 + $0xd8] sm:$0xff] %v693_v36  ;;  %708 = vst [vmem:[%s1188_s8 + $0x50] sm:$0xff] %v676_v39  ;;  %v926_v41 = vpop.f32.mrb[12].mxu0 }
 0x115   : > { %724 = vst [vmem:[%s1188_s8 + $0xd0] sm:$0xff] %v692_v40  ;;  %v950_v42 = vpop.f32.mrb[12].mxu1  ;;  %v679_v43 = vadd.f32 %v926_v41, %v1181_v56  ;;  %v461_v45 = vpop.f32.mrb[13].mxu0 }
 0x116   : > { %v695_v44 = vadd.f32 %v950_v42, %v1181_v56  ;;  %v541_v46 = vpop.f32.mrb[13].mxu1  ;;  %v678_v47 = vadd.f32 %v1181_v56, %v461_v45 }
 0x117   : > { %v694_v48 = vadd.f32 %v1181_v56, %v541_v46  ;;  %711 = vst [vmem:[%s1188_s8 + $0x68] sm:$0xff] %v679_v43 }
 0x118   : > { %727 = vst [vmem:[%s1188_s8 + $0xe8] sm:$0xff] %v695_v44  ;;  %710 = vst [vmem:[%s1188_s8 + $0x60] sm:$0xff] %v678_v47  ;;  %v929_v49 = vpop.f32.mrb[14].mxu0 }
 0x119   : > { %726 = vst [vmem:[%s1188_s8 + $0xe0] sm:$0xff] %v694_v48  ;;  %v953_v50 = vpop.f32.mrb[14].mxu1  ;;  %v681_v51 = vadd.f32 %v929_v49, %v1181_v56  ;;  %v471_v53 = vpop.f32.mrb[15].mxu0 }
 0x11a   : > { %v697_v52 = vadd.f32 %v953_v50, %v1181_v56  ;;  %v551_v54 = vpop.f32.mrb[15].mxu1  ;;  %v680_v55 = vadd.f32 %v1181_v56, %v471_v53 }
 0x11b   : > { %v696_v57 = vadd.f32 %v1181_v56, %v551_v54  ;;  %713 = vst [vmem:[%s1188_s8 + $0x78] sm:$0xff] %v681_v51 }
 0x11c   : > { %729 = vst [vmem:[%s1188_s8 + $0xf8] sm:$0xff] %v697_v52  ;;  %712 = vst [vmem:[%s1188_s8 + $0x70] sm:$0xff] %v680_v55 }
 0x11d   : > { %728 = vst [vmem:[%s1188_s8 + $0xf0] sm:$0xff] %v696_v57 }
 0x11e PF: > { %s13_s14 = sadd.s32 1, %s1048_s14   ;;  %s1267_s12 = smov %s1044_s13 }
 0x11f   : > { %p10_p5 = scmp.ge.s32.totalorder %s13_s14, 4   ;;  %s1268_s13 = smov %s1270_s15 }
 0x121   :  { %12 = sbr.rel (!%p10_p5) target bundleno = 2 (0x2), region = 73 }

// kernel: primary_caps_pallas.3
= control target key start
LH: loop header
LB: loop body
LE: loop exit
PB: predicated region body
PF: predicated region fallthrough
CT: control target
= control target key end

     0   :  { %6 = vsyncpa [#allocation3], 0  ;;  %s825_s0 = inlined_call_operand.vmem [shape: f32[16,4096], index: 0, kind: input, shape index: {}]   ;;  %s826_s1 = inlined_call_operand.hbm [shape: f32[16,4096], index: 1, kind: output, shape index: {}]  }
   0x1   :  { %8 = vsyncpa [#allocation3 + $0x1], 0  ;;  %s492_s6 = smov 0   ;;  %s494_s7 = smov 0  }
   0x2   :  { %s496_s8 = smov 0   ;;  %s498_s9 = smov 0  }
   0x3 LB: > { %s513_s10 = sadd.s32 4294967295, %s479_s9   ;;  %s360_s11 = sadd.s32 4294967294, %s479_s9   ;;  %s479_s9 = sphi %s498_s9, %s832_s9   ;;  %s475_s8 = sphi %s496_s8, %s831_s8   ;;  %s471_s7 = sphi %s494_s7, %s830_s7   ;;  %s467_s6 = sphi %s492_s6, %s829_s6  }
   0x4   : > { %s517_s12 = sadd.s32 1, %s479_s9   ;;  %s47_s13 = sadd.s32 1, %s475_s8 }
   0x5   : > { %s44_s14 = ssub.s32 %s479_s9, %s517_s12  ;;  %p57_p0 = scmp.ne.s32.totalorder %s475_s8, %s471_s7 }
   0x6   : > { %p45_p1 = scmp.eq.s32.totalorder %s44_s14, 0  ;;  %p58_p2 = scmp.eq.s32.totalorder %s513_s10, 1 }
   0x7   : > { %p63_p3 = scmp.ne.s32.totalorder %s471_s7, %s467_s6  ;;  %p64_p4 = scmp.eq.s32.totalorder %s360_s11, 1 }
   0x8   : > { %s528_s15 = scalar_select %p45_p1, %s475_s8, %s47_s13  }
   0x9   : > { %p530_p5 = por %p58_p2, %p57_p0  ;;  %p534_p6 = por %p64_p4, %p63_p3 }
   0xa   : > { %p363_p7 = scmp.ge.s32.totalorder %s479_s9, 1  ;;  %p90_p8 = scmp.lt.s32.totalorder %s479_s9, 3 }
   0xc   : > { %p91_p9 = pnand %p363_p7, %p90_p8 }
   0xd   : > { %p110_p10 = scmp.lt.s32.totalorder (!%p91_p9), %s513_s10, 1  ;;  %s107_s23 = sand.u32 (!%p91_p9), 1, %s471_s7  }
   0xe   : > { %94 = sbr.rel (%p91_p9) target bundleno = 281 (0x119), region = 24  ;;  %s364_s24 = sshll.u32 (!%p91_p9), %s107_s23, 8 }
   0xf   : > { %s722_s25 = scalar_lea.vmem (!%p91_p9), [#allocation2], %s364_s24  ;;  %s373_s26 = sshll.u32 (!%p91_p9), %s513_s10, 12 }
  0x10   : > { %s301_s27 = sshll.u32 (!%p91_p9), %s722_s25, 4  ;;  %s773_s30 = scalar_lea.hbm (!%p91_p9), %s826_s1, %s373_s26  ;;  %s775_s27 = int_to_ptr.vmem [resolvable:$true] %s301_s27 }
  0x11   : > { %s287_s2 = scalar_lea.sflag (!%p91_p9), [#allocation3], %s107_s23  ;;  %s417_s3 = scalar_lea.vmem (!%p91_p9), %s775_s27, 4096 }
  0x12   : > { %p418_p11 = scmp.ne.s32.totalorder (!%p91_p9), %s775_s27, %s417_s3  ;;  %s481_s4 = smov (!%p91_p9), [#allocation2]  }
  0x13   : > { %s421_s5 = sshll.u32 (!%p91_p9), %s481_s4, 4  ;;  %s422_s5 = int_to_ptr.vmem [resolvable:$false] %s421_s5 }
  0x14   : > { %p419_p12 = pnand (!%p91_p9), %p418_p11, %p530_p5  ;;  %p424_p0 = scmp.lt.s32.totalorder (!%p91_p9), %s775_s27, %s422_s5 }
  0x15   : > { %s111_s18 = scalar_select %p110_p10, %s513_s10, 1 }
  0x16   : > { %p420_p13 = pneg %p419_p12  ;;  %s423_s10 = scalar_lea.vmem %s422_s5, 8192 }
  0x17   : > { %s372_s19 = sshll.u32 %s111_s18, 8  ;;  %p425_p1 = scmp.lt.s32.totalorder %s423_s10, %s417_s3 }
  0x18   : > { %s545_s22 = scalar_lea.vmem %s825_s0, %s372_s19 }
  0x19   : > { %v548_v0 = vld [vmem:[%s545_s22] sm:$0xff]  ;;  %v551_v1 = vld [vmem:[%s545_s22 + $0x8] sm:$0xff]  ;;  %v554_v2 = vld [vmem:[%s545_s22 + $0x10] sm:$0xff]  ;;  %p426_p2 = por %p425_p1, %p424_p0 }
  0x1a   : > { %v557_v3 = vld [vmem:[%s545_s22 + $0x18] sm:$0xff]  ;;  %v147_v4 = vmul.f32 %v548_v0, %v548_v0  ;;  %v148_v5 = vmul.f32 %v551_v1, %v551_v1  ;;  %v149_v6 = vmul.f32 %v554_v2, %v554_v2  ;;  %v566_v7 = vld [vmem:[%s545_s22 + $0x20] sm:$0xff]  ;;  %v571_v10 = vld [vmem:[%s545_s22 + $0x28] sm:$0xff] }
  0x1b   : > { %v150_v8 = vmul.f32 %v557_v3, %v557_v3  ;;  %v151_v11 = vmul.f32 %v566_v7, %v566_v7  ;;  %v576_v13 = vld [vmem:[%s545_s22 + $0x30] sm:$0xff]  ;;  %v152_v14 = vmul.f32 %v571_v10, %v571_v10  ;;  %v581_v16 = vld [vmem:[%s545_s22 + $0x38] sm:$0xff]  ;;  %v586_v19 = vld [vmem:[%s545_s22 + $0x40] sm:$0xff]  ;;  %p427_p3 = pnand %p426_p2, %p420_p13 }
  0x1c   : > { %v179_v9 = vadd.f32 %v148_v5, %v147_v4  ;;  %v153_v17 = vmul.f32 %v576_v13, %v576_v13  ;;  %v154_v20 = vmul.f32 %v581_v16, %v581_v16  ;;  %v591_v22 = vld [vmem:[%s545_s22 + $0x48] sm:$0xff]  ;;  %v155_v23 = vmul.f32 %v586_v19, %v586_v19  ;;  %v596_v25 = vld [vmem:[%s545_s22 + $0x50] sm:$0xff]  ;;  %v601_v28 = vld [vmem:[%s545_s22 + $0x58] sm:$0xff] }
  0x1d   : > { %v156_v26 = vmul.f32 %v591_v22, %v591_v22  ;;  %v157_v29 = vmul.f32 %v596_v25, %v596_v25  ;;  %v606_v31 = vld [vmem:[%s545_s22 + $0x60] sm:$0xff]  ;;  %v158_v32 = vmul.f32 %v601_v28, %v601_v28  ;;  %v611_v34 = vld [vmem:[%s545_s22 + $0x68] sm:$0xff]  ;;  %v616_v37 = vld [vmem:[%s545_s22 + $0x70] sm:$0xff] }
  0x1e   : > { %v180_v12 = vadd.f32 %v179_v9, %v149_v6  ;;  %v159_v35 = vmul.f32 %v606_v31, %v606_v31  ;;  %v160_v38 = vmul.f32 %v611_v34, %v611_v34  ;;  %v621_v40 = vld [vmem:[%s545_s22 + $0x78] sm:$0xff]  ;;  %v161_v41 = vmul.f32 %v616_v37, %v616_v37  ;;  %v626_v43 = vld [vmem:[%s545_s22 + $0x80] sm:$0xff]  ;;  %v631_v46 = vld [vmem:[%s545_s22 + $0x88] sm:$0xff] }
  0x1f   : > { %v162_v44 = vmul.f32 %v621_v40, %v621_v40  ;;  %v163_v47 = vmul.f32 %v626_v43, %v626_v43  ;;  %v636_v49 = vld [vmem:[%s545_s22 + $0x90] sm:$0xff]  ;;  %v164_v50 = vmul.f32 %v631_v46, %v631_v46  ;;  %v641_v52 = vld [vmem:[%s545_s22 + $0x98] sm:$0xff]  ;;  %v646_v55 = vld [vmem:[%s545_s22 + $0xa0] sm:$0xff] }
  0x20   : > { %v181_v15 = vadd.f32 %v180_v12, %v150_v8  ;;  %v165_v53 = vmul.f32 %v636_v49, %v636_v49  ;;  %v166_v56 = vmul.f32 %v641_v52, %v641_v52  ;;  %v651_v58 = vld [vmem:[%s545_s22 + $0xa8] sm:$0xff]  ;;  %v167_v59 = vmul.f32 %v646_v55, %v646_v55  ;;  %v656_v61 = vld [vmem:[%s545_s22 + $0xb0] sm:$0xff]  ;;  %v661_v4 = vld [vmem:[%s545_s22 + $0xb8] sm:$0xff] }
  0x21   : > { %v168_v62 = vmul.f32 %v651_v58, %v651_v58  ;;  %v169_v5 = vmul.f32 %v656_v61, %v656_v61  ;;  %v666_v8 = vld [vmem:[%s545_s22 + $0xc0] sm:$0xff]  ;;  %v170_v9 = vmul.f32 %v661_v4, %v661_v4  ;;  %v671_v12 = vld [vmem:[%s545_s22 + $0xc8] sm:$0xff] }
  0x22   : > { %v182_v18 = vadd.f32 %v181_v15, %v151_v11 }
  0x24   : > { %v183_v21 = vadd.f32 %v182_v18, %v152_v14  ;;  %v171_v14 = vmul.f32 %v666_v8, %v666_v8  ;;  %v172_v18 = vmul.f32 %v671_v12, %v671_v12 }
  0x26   : > { %v184_v24 = vadd.f32 %v183_v21, %v153_v17  ;;  %v676_v17 = vld [vmem:[%s545_s22 + $0xd0] sm:$0xff]  ;;  %v681_v21 = vld [vmem:[%s545_s22 + $0xd8] sm:$0xff] }
  0x28   : > { %v185_v27 = vadd.f32 %v184_v24, %v154_v20 }
  0x2a   : > { %v186_v30 = vadd.f32 %v185_v27, %v155_v23  ;;  %v173_v23 = vmul.f32 %v676_v17, %v676_v17  ;;  %v174_v27 = vmul.f32 %v681_v21, %v681_v21 }
  0x2c   : > { %v187_v33 = vadd.f32 %v186_v30, %v156_v26  ;;  %v686_v26 = vld [vmem:[%s545_s22 + $0xe0] sm:$0xff]  ;;  %v691_v30 = vld [vmem:[%s545_s22 + $0xe8] sm:$0xff] }
  0x2e   : > { %v188_v36 = vadd.f32 %v187_v33, %v157_v29 }
  0x30   : > { %v189_v39 = vadd.f32 %v188_v36, %v158_v32  ;;  %v175_v32 = vmul.f32 %v686_v26, %v686_v26  ;;  %v176_v36 = vmul.f32 %v691_v30, %v691_v30 }
  0x32   : > { %v190_v42 = vadd.f32 %v189_v39, %v159_v35  ;;  %v696_v35 = vld [vmem:[%s545_s22 + $0xf0] sm:$0xff]  ;;  %v701_v39 = vld [vmem:[%s545_s22 + $0xf8] sm:$0xff] }
  0x34   : > { %v191_v45 = vadd.f32 %v190_v42, %v160_v38 }
  0x36   : > { %v192_v48 = vadd.f32 %v191_v45, %v161_v41  ;;  %v177_v41 = vmul.f32 %v696_v35, %v696_v35 }
  0x38   : > { %v193_v51 = vadd.f32 %v192_v48, %v162_v44  ;;  %v178_v44 = vmul.f32 %v701_v39, %v701_v39 }
  0x3a   : > { %v194_v54 = vadd.f32 %v193_v51, %v163_v47 }
  0x3c   : > { %v195_v57 = vadd.f32 %v194_v54, %v164_v50 }
  0x3e   : > { %v196_v60 = vadd.f32 %v195_v57, %v165_v53 }
  0x40   : > { %v197_v63 = vadd.f32 %v196_v60, %v166_v56 }
  0x42   : > { %v198_v6 = vadd.f32 %v197_v63, %v167_v59 }
  0x44   : > { %v199_v11 = vadd.f32 %v198_v6, %v168_v62 }
  0x46   : > { %v200_v15 = vadd.f32 %v199_v11, %v169_v5 }
  0x48   : > { %v201_v20 = vadd.f32 %v200_v15, %v170_v9 }
  0x4a   : > { %v202_v24 = vadd.f32 %v201_v20, %v171_v14 }
  0x4c   : > { %v203_v29 = vadd.f32 %v202_v24, %v172_v18 }
  0x4e   : > { %v204_v33 = vadd.f32 %v203_v29, %v173_v23 }
  0x50   : > { %v205_v38 = vadd.f32 %v204_v33, %v174_v27 }
  0x52   : > { %v206_v42 = vadd.f32 %v205_v38, %v175_v32 }
  0x54   : > { %v207_v45 = vadd.f32 %v206_v42, %v176_v36 }
  0x56   : > { %v208_v47 = vadd.f32 %v207_v45, %v177_v41 }
  0x58   : > { %v209_v48 = vadd.f32 %v208_v47, %v178_v44 }
  0x5a   : > { %210 = vadd.xlane.f32.xlu0 %v209_v48 }
  0xe7   : > { %v211_v50 = vpop.xlane.xlu0 %210 }
  0xe8   : > { %413 = vrsqrt.f32 %v211_v50  ;;  %v219_v51 = vadd.f32 1.0, %v211_v50  ;;  %vm214_vm0 = vcmp.eq.f32.partialorder %v211_v50, inf  ;;  %v217_v56 = vand.u32 2147483648, %v211_v50 }
  0xe9   : > { %vm216_vm1 = vcmp.eq.f32.partialorder %v211_v50, 0.0 }
  0xea   : > { %415 = vrcp.f32 %v219_v51 }
  0xf2   : > { %v414_v53 = vpop.eup %413 }
  0xf3   : > { %v213_v54 = vmul.f32 %v414_v53, %v211_v50 }
  0xf4   : > { %v416_v59 = vpop.eup %415 }
  0xf5   : > { %v215_v57 = vsel %vm214_vm0, %v211_v50, %v213_v54 }
  0xf6   : > { %v218_v60 = vsel %vm216_vm1, %v217_v56, %v215_v57 }
  0xf7   : > { %v221_v62 = vmul.f32 %v416_v59, %v218_v60 }
  0xf9   : > { %v222_v63 = vmul.f32 %v221_v62, %v548_v0  ;;  %v223_v5 = vmul.f32 %v221_v62, %v551_v1  ;;  %v224_v6 = vmul.f32 %v221_v62, %v554_v2  ;;  %v225_v9 = vmul.f32 %v221_v62, %v557_v3 }
  0xfa   : > { %v226_v11 = vmul.f32 %v221_v62, %v566_v7  ;;  %v227_v14 = vmul.f32 %v221_v62, %v571_v10  ;;  %v228_v15 = vmul.f32 %v221_v62, %v576_v13  ;;  %v229_v18 = vmul.f32 %v221_v62, %v581_v16 }
  0xfb   : > { %v230_v20 = vmul.f32 %v221_v62, %v586_v19  ;;  %v231_v23 = vmul.f32 %v221_v62, %v591_v22  ;;  %v232_v0 = vmul.f32 %v221_v62, %v596_v25  ;;  %v233_v1 = vmul.f32 %v221_v62, %v601_v28  ;;  %254 = vst [vmem:[%s722_s25] sm:$0xff] %v222_v63 }
  0xfc   : > { %255 = vst [vmem:[%s722_s25 + $0x8] sm:$0xff] %v223_v5  ;;  %256 = vst [vmem:[%s722_s25 + $0x10] sm:$0xff] %v224_v6  ;;  %v234_v2 = vmul.f32 %v221_v62, %v606_v31  ;;  %v235_v3 = vmul.f32 %v221_v62, %v611_v34  ;;  %v236_v7 = vmul.f32 %v221_v62, %v616_v37 }
  0xfd   : > { %257 = vst [vmem:[%s722_s25 + $0x18] sm:$0xff] %v225_v9  ;;  %v237_v10 = vmul.f32 %v221_v62, %v621_v40  ;;  %258 = vst [vmem:[%s722_s25 + $0x20] sm:$0xff] %v226_v11  ;;  %v238_v13 = vmul.f32 %v221_v62, %v626_v43  ;;  %v239_v16 = vmul.f32 %v221_v62, %v631_v46 }
  0xfe   : > { %259 = vst [vmem:[%s722_s25 + $0x28] sm:$0xff] %v227_v14  ;;  %260 = vst [vmem:[%s722_s25 + $0x30] sm:$0xff] %v228_v15  ;;  %v240_v19 = vmul.f32 %v221_v62, %v636_v49  ;;  %v241_v22 = vmul.f32 %v221_v62, %v641_v52  ;;  %v242_v25 = vmul.f32 %v221_v62, %v646_v55 }
  0xff   : > { %261 = vst [vmem:[%s722_s25 + $0x38] sm:$0xff] %v229_v18  ;;  %262 = vst [vmem:[%s722_s25 + $0x40] sm:$0xff] %v230_v20  ;;  %v243_v28 = vmul.f32 %v221_v62, %v651_v58  ;;  %v244_v31 = vmul.f32 %v221_v62, %v656_v61  ;;  %v245_v34 = vmul.f32 %v221_v62, %v661_v4 }
 0x100   : > { %263 = vst [vmem:[%s722_s25 + $0x48] sm:$0xff] %v231_v23  ;;  %264 = vst [vmem:[%s722_s25 + $0x50] sm:$0xff] %v232_v0  ;;  %v246_v37 = vmul.f32 %v221_v62, %v666_v8  ;;  %v247_v40 = vmul.f32 %v221_v62, %v671_v12  ;;  %v248_v43 = vmul.f32 %v221_v62, %v676_v17 }
 0x101   : > { %265 = vst [vmem:[%s722_s25 + $0x58] sm:$0xff] %v233_v1  ;;  %266 = vst [vmem:[%s722_s25 + $0x60] sm:$0xff] %v234_v2  ;;  %v249_v46 = vmul.f32 %v221_v62, %v681_v21  ;;  %v250_v49 = vmul.f32 %v221_v62, %v686_v26  ;;  %v251_v52 = vmul.f32 %v221_v62, %v691_v30 }
 0x102   : > { %267 = vst [vmem:[%s722_s25 + $0x68] sm:$0xff] %v235_v3  ;;  %268 = vst [vmem:[%s722_s25 + $0x70] sm:$0xff] %v236_v7  ;;  %v252_v55 = vmul.f32 %v221_v62, %v696_v35  ;;  %v253_v58 = vmul.f32 %v221_v62, %v701_v39 }
 0x103   : > { %269 = vst [vmem:[%s722_s25 + $0x78] sm:$0xff] %v237_v10  ;;  %270 = vst [vmem:[%s722_s25 + $0x80] sm:$0xff] %v238_v13 }
 0x104   : > { %271 = vst [vmem:[%s722_s25 + $0x88] sm:$0xff] %v239_v16  ;;  %272 = vst [vmem:[%s722_s25 + $0x90] sm:$0xff] %v240_v19 }
 0x105   : > { %273 = vst [vmem:[%s722_s25 + $0x98] sm:$0xff] %v241_v22  ;;  %274 = vst [vmem:[%s722_s25 + $0xa0] sm:$0xff] %v242_v25 }
 0x106   : > { %275 = vst [vmem:[%s722_s25 + $0xa8] sm:$0xff] %v243_v28  ;;  %276 = vst [vmem:[%s722_s25 + $0xb0] sm:$0xff] %v244_v31 }
 0x107   : > { %277 = vst [vmem:[%s722_s25 + $0xb8] sm:$0xff] %v245_v34  ;;  %278 = vst [vmem:[%s722_s25 + $0xc0] sm:$0xff] %v246_v37 }
 0x108   : > { %279 = vst [vmem:[%s722_s25 + $0xc8] sm:$0xff] %v247_v40  ;;  %280 = vst [vmem:[%s722_s25 + $0xd0] sm:$0xff] %v248_v43 }
 0x109   : > { %281 = vst [vmem:[%s722_s25 + $0xd8] sm:$0xff] %v249_v46  ;;  %282 = vst [vmem:[%s722_s25 + $0xe0] sm:$0xff] %v250_v49 }
 0x10a   : > { %283 = vst [vmem:[%s722_s25 + $0xe8] sm:$0xff] %v251_v52  ;;  %284 = vst [vmem:[%s722_s25 + $0xf0] sm:$0xff] %v252_v55 }
 0x10b   : > { %285 = vst [vmem:[%s722_s25 + $0xf8] sm:$0xff] %v253_v58 }
 0x10c   : > { %430 = shalt.err (!%p427_p3)
}
 0x10d   : > { %s431_s11 = scalar_lea.hbm %s773_s30, 4096  ;;  %s435_s18 = scalar_lea.hbm %s826_s1, 8192 }
 0x10e   : > { %p432_p4 = scmp.ne.s32.totalorder %s773_s30, %s431_s11  ;;  %p436_p9 = scmp.lt.u32.totalorder %s773_s30, %s826_s1 }
 0x10f   : > { %p437_p10 = scmp.lt.u32.totalorder %s435_s18, %s431_s11  ;;  %p439_p12 = scmp.lt.u32.totalorder %s431_s11, %s773_s30 }
 0x110   : > { %p433_p7 = pnand %p432_p4, %p530_p5 }
 0x111   : > { %p438_p11 = por %p437_p10, %p436_p9 }
 0x112   : > { %p434_p8 = pneg %p433_p7 }
 0x113   : > { %p440_p13 = por %p439_p12, %p438_p11 }
 0x115   : > { %p441_p0 = pnand %p440_p13, %p434_p8 }
 0x117   : > { %444 = shalt.err (!%p441_p0)
}
 0x118   : > { %374 = dma.vmem_to_hbm [thread:$0]  (%p530_p5), %s775_s27, 4096, %s773_s30, %s287_s2  }
 0x119 PF: > { %p380_p1 = scmp.ge.s32.totalorder %s479_s9, 2  ;;  %s313_s21 = sand.u32 1, %s467_s6  }
 0x11a   : > { %s314_s22 = scalar_lea.sflag [#allocation3], %s313_s21 }
 0x11b   : > { %p377_p2 = pnand %p380_p1, %p534_p6 }
 0x11d   : > { %462 = dma.done.wait (!%p377_p2), %s314_s22, 4096  }
 0x11e   : > { %464 = vsyncadd (!%p377_p2), %s314_s22, 4294963200  ;;  %p11_p3 = scmp.ge.s32.totalorder %s517_s12, 4   ;;  %s829_s6 = smov %s471_s7 }
 0x11f   : > { %s830_s7 = smov %s475_s8  ;;  %s831_s8 = smov %s528_s15 }
 0x120   : > { %s832_s9 = smov %s517_s12  ;;  %13 = sbr.rel (!%p11_p3) target bundleno = 3 (0x3), region = 59 }
 0x127   :  { %319 = vsyncpa [#allocation3], 1 }
 0x128   :  { %321 = vsyncpa [#allocation3 + $0x1], 1 }

</bundles_post_ra>
